<compile_context>
chip_gen: v5e
topology: v5e:2x2
jax: 0.10.0
libtpu: 0.0.40
codegen_flags: <defaults>
</compile_context>

<pallas_src>
import functools

import jax
import jax.numpy as jnp
from jax.experimental import pallas as pl
from jax.experimental.pallas import tpu as pltpu

LN_EPS = 1e-5  # nn.LayerNorm default


def _round_up(x, m):
    return ((x + m - 1) // m) * m


def _pick_col_tile(D, w_itemsize):
    # Keep the whole weight resident when it is small; otherwise tile the output
    # (N) columns with a 128-aligned divisor so large D fits v7x's smaller VMEM.
    if D * D * w_itemsize <= (8 << 20):
        return D
    for ct in (1024, 512, 256, 128):
        if D % ct == 0:
            return ct
    return D  # non-128-multiple large D: fall back to full width


def _pick_row_tile(R, D, col_tile, itemsize, budget_bytes=24 << 20):
    # Budget the double-buffered x tile + output tile + resident weight tile
    # against a conservative VMEM budget that fits v5e/v6e/v7x.
    align = 16 if itemsize < 4 else 8          # bf16 packs 2 rows / sublane
    fixed = 2 * D * col_tile * itemsize + 6 * D * itemsize
    per_row = 2 * (D + col_tile) * itemsize    # x + out, double buffered
    avail = max(budget_bytes - fixed, per_row * align)
    rt = min(avail // per_row, 1024)
    if rt >= 256:
        rt = (rt // 256) * 256                 # MXU-friendly on v6e/v7x (and 128 | 256)
    rt = min(rt, _round_up(R, align))          # don't over-tile tiny inputs
    rt = max((rt // align) * align, align)
    return int(rt)


def _prenorm_linear_kernel(x_ref, gamma_ref, beta_ref, w_ref, b_ref, o_ref):
    # x_ref: (TR, D) row tile; gamma/beta: (1, D); w: (D, TC); b: (1, TC); o: (TR, TC)
    x = x_ref[...]
    xf = x.astype(jnp.float32)
    d = xf.shape[-1]

    # --- LayerNorm stats: single fused pass (sum & sum of squares) ---
    s1 = jnp.sum(xf, axis=-1, keepdims=True)
    s2 = jnp.sum(xf * xf, axis=-1, keepdims=True)
    mean = s1 * (1.0 / d)
    var = s2 * (1.0 / d) - mean * mean
    inv = jax.lax.rsqrt(var + LN_EPS)          # EUP slot, effectively free here

    xn = (xf - mean) * inv * gamma_ref[...].astype(jnp.float32) \
         + beta_ref[...].astype(jnp.float32)

    # --- fn(...): Linear(D -> D) on the MXU. Operands in the model dtype
    #     (bf16-native with f32 accumulation); no f32-upcast of the weight. ---
    y = jnp.dot(xn.astype(w_ref.dtype), w_ref[...],
                preferred_element_type=jnp.float32)
    y = y + b_ref[...].astype(jnp.float32)

    o_ref[...] = y.astype(o_ref.dtype)


@functools.partial(jax.jit, static_argnames=("row_tile", "col_tile"))
def prenorm_forward(x, gamma, beta, w, b, *, row_tile=None, col_tile=None):
    """PreNorm forward: fn(LayerNorm(x)) with fn = Linear(D, D).

    x: (B, N, D); gamma, beta: (D,); w: (D, D); b: (D,)
    """
    B, N, D = x.shape
    R = B * N
    itemsize = jnp.dtype(x.dtype).itemsize

    if col_tile is None:
        col_tile = _pick_col_tile(D, jnp.dtype(w.dtype).itemsize)
    if row_tile is None:
        row_tile = _pick_row_tile(R, D, col_tile, itemsize)

    R_pad = _round_up(R, row_tile)
    x2 = x.reshape(R, D)
    if R_pad != R:
        # Zero-pad ragged row counts (e.g. 197 ViT tokens); padded rows are sliced off.
        x2 = jnp.pad(x2, ((0, R_pad - R), (0, 0)))

    gamma2 = gamma.reshape(1, D)
    beta2 = beta.reshape(1, D)
    b2 = b.reshape(1, D)

    grid = (R_pad // row_tile, D // col_tile)

    out2 = pl.pallas_call(
        _prenorm_linear_kernel,
        out_shape=jax.ShapeDtypeStruct((R_pad, D), x.dtype),
        grid_spec=pl.GridSpec(
            grid=grid,
            in_specs=[
                pl.BlockSpec((row_tile, D), lambda i, j: (i, 0)),      # x row tile
                pl.BlockSpec((1, D), lambda i, j: (0, 0)),             # gamma
                pl.BlockSpec((1, D), lambda i, j: (0, 0)),             # beta
                pl.BlockSpec((D, col_tile), lambda i, j: (0, j)),      # weight col tile
                pl.BlockSpec((1, col_tile), lambda i, j: (0, j)),      # bias col tile
            ],
            out_specs=pl.BlockSpec((row_tile, col_tile), lambda i, j: (i, j)),
        ),
        compiler_params=pltpu.CompilerParams(
            dimension_semantics=("parallel", "parallel"),
            vmem_limit_bytes=40 * 1024 * 1024,
        ),
    )(x2, gamma2, beta2, w, b2)

    return out2[:R].reshape(B, N, D)


def prenorm_reference(x, gamma, beta, w, b):
    xf = x.astype(jnp.float32)
    mean = jnp.mean(xf, axis=-1, keepdims=True)
    var = jnp.mean((xf - mean) ** 2, axis=-1, keepdims=True)
    xn = (xf - mean) * jax.lax.rsqrt(var + LN_EPS) * gamma.astype(jnp.float32) \
         + beta.astype(jnp.float32)
    return xn @ w.astype(jnp.float32) + b.astype(jnp.float32)


if __name__ == "__main__":
    # Small shapes consistent with the module: batch=2, seq=8, dim=32 (toy; real ViT
    # dims should be multiples of 128 for lane-dense stores).
    B, N, D = 2, 8, 32

    key = jax.random.PRNGKey(0)
    kx, kw = jax.random.split(key, 2)

    x = jax.random.normal(kx, (B, N, D), dtype=jnp.float32)
    # PyTorch LayerNorm default init: weight=1, bias=0.
    gamma = jnp.ones((D,), dtype=jnp.float32)
    beta = jnp.zeros((D,), dtype=jnp.float32)
    # fn = Linear(D, D): deterministic random weight, zero bias.
    w = jax.random.normal(kw, (D, D), dtype=jnp.float32) * (1.0 / jnp.sqrt(D))
    b = jnp.zeros((D,), dtype=jnp.float32)

    ref = prenorm_reference(x, gamma, beta, w, b)

    # f32 path (matches reference tightly).
    out = jax.block_until_ready(prenorm_forward(x, gamma, beta, w, b))
    assert out.shape == (B, N, D)
    assert jnp.allclose(out, ref, atol=1e-4, rtol=1e-4), "f32 mismatch vs reference"

    # bf16 path (MXU-native operands, f32 accumulation; looser tolerance is expected).
    out_bf16 = jax.block_until_ready(
        prenorm_forward(x.astype(jnp.bfloat16), gamma.astype(jnp.bfloat16),
                        beta.astype(jnp.bfloat16), w.astype(jnp.bfloat16),
                        b.astype(jnp.bfloat16)))
    assert jnp.allclose(out_bf16.astype(jnp.float32), ref, atol=1e-1, rtol=1e-1), \
        "bf16 mismatch vs reference"

    # TODO(synk): `fn` in the original module is an arbitrary sub-module (attention /
    # MLP); a Linear(D, D) stands in for it here. The norm_type != 'layer'
    # (NormSelect) branch is not implemented.
    print("KERNEL_OK")
</pallas_src>

<mosaic_0001>
module attributes {stable_mosaic.version = 11 : i64} {
  func.func @_prenorm_linear_kernel(%arg0: i32, %arg1: i32, %arg2: memref<16x32xf32, #tpu.memory_space<vmem>>, %arg3: memref<1x32xf32, #tpu.memory_space<vmem>>, %arg4: memref<1x32xf32, #tpu.memory_space<vmem>>, %arg5: memref<32x32xf32, #tpu.memory_space<vmem>>, %arg6: memref<1x32xf32, #tpu.memory_space<vmem>>, %arg7: memref<16x32xf32, #tpu.memory_space<vmem>>) attributes {dimension_semantics = [#tpu.dimension_semantics<parallel>, #tpu.dimension_semantics<parallel>], iteration_bounds = array<i64: 1, 1>, scalar_prefetch = 0 : i64, scratch_operands = 0 : i64, tpu.core_type = #tpu.core_type<tc>, window_params = [{transform_indices = @transform_0, window_bounds = array<i64: 16, 32>}, {pipeline_mode = #tpu.pipeline_mode<synchronous>, transform_indices = @transform_1, window_bounds = array<i64: 1, 32>}, {pipeline_mode = #tpu.pipeline_mode<synchronous>, transform_indices = @transform_2, window_bounds = array<i64: 1, 32>}, {transform_indices = @transform_3, window_bounds = array<i64: 32, 32>}, {transform_indices = @transform_4, window_bounds = array<i64: 1, 32>}, {transform_indices = @transform_5, window_bounds = array<i64: 16, 32>}]} {
    %c0 = arith.constant 0 : index
    %c0_0 = arith.constant 0 : index
    %0 = vector.load %arg2[%c0, %c0_0] : memref<16x32xf32, #tpu.memory_space<vmem>>, vector<16x32xf32>
    %cst = arith.constant dense<0.000000e+00> : vector<16xf32>
    %1 = vector.multi_reduction <add>, %0, %cst [1] : vector<16x32xf32> to vector<16xf32>
    %2 = vector.shape_cast %1 : vector<16xf32> to vector<16x1xf32>
    %3 = arith.mulf %0, %0 : vector<16x32xf32>
    %cst_1 = arith.constant dense<0.000000e+00> : vector<16xf32>
    %4 = vector.multi_reduction <add>, %3, %cst_1 [1] : vector<16x32xf32> to vector<16xf32>
    %5 = vector.shape_cast %4 : vector<16xf32> to vector<16x1xf32>
    %cst_2 = arith.constant 3.125000e-02 : f32
    %6 = vector.broadcast %cst_2 : f32 to vector<16x1xf32>
    %7 = arith.mulf %2, %6 : vector<16x1xf32>
    %cst_3 = arith.constant 3.125000e-02 : f32
    %8 = vector.broadcast %cst_3 : f32 to vector<16x1xf32>
    %9 = arith.mulf %5, %8 : vector<16x1xf32>
    %10 = arith.mulf %7, %7 : vector<16x1xf32>
    %11 = arith.subf %9, %10 : vector<16x1xf32>
    %cst_4 = arith.constant 9.99999974E-6 : f32
    %12 = vector.broadcast %cst_4 : f32 to vector<16x1xf32>
    %13 = arith.addf %11, %12 : vector<16x1xf32>
    %14 = math.rsqrt %13 : vector<16x1xf32>
    %15 = vector.broadcast %7 : vector<16x1xf32> to vector<16x32xf32>
    %16 = arith.subf %0, %15 : vector<16x32xf32>
    %17 = vector.broadcast %14 : vector<16x1xf32> to vector<16x32xf32>
    %18 = arith.mulf %16, %17 : vector<16x32xf32>
    %c0_5 = arith.constant 0 : index
    %c0_6 = arith.constant 0 : index
    %19 = vector.load %arg3[%c0_5, %c0_6] : memref<1x32xf32, #tpu.memory_space<vmem>>, vector<1x32xf32>
    %20 = vector.broadcast %19 : vector<1x32xf32> to vector<16x32xf32>
    %21 = arith.mulf %18, %20 : vector<16x32xf32>
    %c0_7 = arith.constant 0 : index
    %c0_8 = arith.constant 0 : index
    %22 = vector.load %arg4[%c0_7, %c0_8] : memref<1x32xf32, #tpu.memory_space<vmem>>, vector<1x32xf32>
    %23 = vector.broadcast %22 : vector<1x32xf32> to vector<16x32xf32>
    %24 = arith.addf %21, %23 : vector<16x32xf32>
    %c0_9 = arith.constant 0 : index
    %c0_10 = arith.constant 0 : index
    %25 = vector.load %arg5[%c0_9, %c0_10] : memref<32x32xf32, #tpu.memory_space<vmem>>, vector<32x32xf32>
    %cst_11 = arith.constant dense<0.000000e+00> : vector<16x32xf32>
    %26 = tpu.matmul %24, %25, %cst_11 {dimension_numbers = #tpu.dot_dimension_numbers<[1], [0], [0], [1], [0, 0, 1, 1], [], []>} : vector<16x32xf32>, vector<32x32xf32>, vector<16x32xf32> -> vector<16x32xf32>
    %c0_12 = arith.constant 0 : index
    %c0_13 = arith.constant 0 : index
    %27 = vector.load %arg6[%c0_12, %c0_13] : memref<1x32xf32, #tpu.memory_space<vmem>>, vector<1x32xf32>
    %28 = vector.broadcast %27 : vector<1x32xf32> to vector<16x32xf32>
    %29 = arith.addf %26, %28 : vector<16x32xf32>
    %c0_14 = arith.constant 0 : index
    %c0_15 = arith.constant 0 : index
    %30 = vector.load %arg7[%c0_14, %c0_15] : memref<16x32xf32, #tpu.memory_space<vmem>>, vector<16x32xf32>
    tpu.vector_store %arg7[%c0_14, %c0_15], %29 {strides = array<i32>} : memref<16x32xf32, #tpu.memory_space<vmem>>, vector<16x32xf32>,
    return
  }
  func.func @transform_0(%arg0: i32, %arg1: i32) -> (i32, i32) {
    %c0_i32 = arith.constant 0 : i32
    %c0_i32_0 = arith.constant 0 : i32
    return %arg0, %c0_i32 : i32, i32
  }
  func.func @transform_1(%arg0: i32, %arg1: i32) -> (i32, i32) {
    %c0_i32 = arith.constant 0 : i32
    %c0_i32_0 = arith.constant 0 : i32
    %c0_i32_1 = arith.constant 0 : i32
    return %c0_i32, %c0_i32_0 : i32, i32
  }
  func.func @transform_2(%arg0: i32, %arg1: i32) -> (i32, i32) {
    %c0_i32 = arith.constant 0 : i32
    %c0_i32_0 = arith.constant 0 : i32
    %c0_i32_1 = arith.constant 0 : i32
    return %c0_i32, %c0_i32_0 : i32, i32
  }
  func.func @transform_3(%arg0: i32, %arg1: i32) -> (i32, i32) {
    %c0_i32 = arith.constant 0 : i32
    %c0_i32_0 = arith.constant 0 : i32
    return %c0_i32, %arg1 : i32, i32
  }
  func.func @transform_4(%arg0: i32, %arg1: i32) -> (i32, i32) {
    %c0_i32 = arith.constant 0 : i32
    %c0_i32_0 = arith.constant 0 : i32
    return %c0_i32, %arg1 : i32, i32
  }
  func.func @transform_5(%arg0: i32, %arg1: i32) -> (i32, i32) {
    %c0_i32 = arith.constant 0 : i32
    return %arg0, %arg1 : i32, i32
  }
}

</mosaic_0001>

<bundles_post_ra>
// kernel: prenorm_forward.1
= control target key start
LH: loop header
LB: loop body
LE: loop exit
PB: predicated region body
PF: predicated region fallthrough
CT: control target
= control target key end

     0   :  { %10 = vsyncpa [#allocation3], 0  ;;  %s347_s0 = inlined_call_operand.hbm [shape: f32[16,32], index: 0, kind: input, shape index: {}]   ;;  %s348_s1 = inlined_call_operand.vmem [shape: f32[1,32], index: 1, kind: input, shape index: {}]   ;;  %s349_s2 = inlined_call_operand.vmem [shape: f32[1,32], index: 2, kind: input, shape index: {}]   ;;  %s350_s3 = inlined_call_operand.hbm [shape: f32[32,32], index: 3, kind: input, shape index: {}]   ;;  %s351_s4 = inlined_call_operand.vmem [shape: f32[1,32], index: 4, kind: input, shape index: {}]   ;;  %s352_s5 = inlined_call_operand.hbm [shape: f32[16,32], index: 5, kind: output, shape index: {}]  }
   0x1   :  { %11 = vsyncpa [#allocation6], 0 }
   0x2   :  { %12 = vsyncpa [#allocation4], 0  ;;  %s17_s20 = sshll.u32 %s347_s0, 4  ;;  %s271_s21 = smov [#allocation2]   ;;  %s18_s20 = int_to_ptr.hbm [resolvable:$true] %s17_s20 }
   0x3   :  { %s19_s22 = sshll.u32 %s271_s21, 4  ;;  %s34_s25 = sshll.u32 %s350_s3, 4  ;;  %s20_s22 = int_to_ptr.vmem [resolvable:$true] %s19_s22  ;;  %s35_s25 = int_to_ptr.hbm [resolvable:$true] %s34_s25 }
   0x4   :  { %s272_s26 = smov 128   ;;  %s273_s27 = smov 8  }
   0x5   :  { %25 = dma.hbm_to_vmem [thread:$0]  %s18_s20, 256, %s20_s22, [#allocation3], %s272_s26, %s272_s26, %s273_s27  }
   0x6   :  { %s274_s28 = smov [#allocation5]  }
   0x7   :  { %s36_s29 = sshll.u32 %s274_s28, 4  ;;  %s37_s29 = int_to_ptr.vmem [resolvable:$true] %s36_s29 }
   0x8   :  { %42 = dma.hbm_to_vmem [thread:$0]  %s35_s25, 512, %s37_s29, [#allocation6], %s272_s26, %s272_s26, %s273_s27  }
   0x9   :  { %265 = dma.done.wait [#allocation3], 256  }
   0xa   :  { %266 = vsyncadd [#allocation3], 4294967040 }
   0xb   :  { %267 = dma.done.wait [#allocation6], 512  }
   0xc   :  { %268 = vsyncadd [#allocation6], 4294966784  ;;  %vm55_vm0 = vcmask 261120   ;;  %v53_v0 = vld [vmem:[#allocation2] sm:$0xff]  ;;  %v319_v3 = vld [vmem:[#allocation2 + $0x8] sm:$0xff]  ;;  %s275_s7 = smov [#allocation7]  }
   0xd   :  { %v56_v1 = vsel %vm55_vm0, %v53_v0, 0.0  ;;  %v62_v2 = vmul.f32 %v53_v0, %v53_v0  ;;  %v63_v5 = vmul.f32 %v319_v3, %v319_v3  ;;  %v59_v6 = vsel %vm55_vm0, %v319_v3, 0.0  ;;  %v119_v8 = vld [vmem:[#allocation5 + $0x18] sm:$0xff]  ;;  %v118_v9 = vld [vmem:[#allocation5 + $0x10] sm:$0xff]  ;;  %v117_v10 = vld [vmem:[#allocation5 + $0x8] sm:$0xff]  ;;  %s159_s8 = sshll.u32 %s275_s7, 4  ;;  %s160_s8 = int_to_ptr.vmem [resolvable:$true] %s159_s8 }
   0xe   :  { %57 = vadd.xlane.f32.xlu0 %v56_v1  ;;  %142 = vmatpush.msra.mxu0 %v119_v8  ;;  %v116_v11 = vld [vmem:[#allocation5] sm:$0xff]  ;;  %v186_v35 = vld [vmem:[%s348_s1] ss:$0 sm:$0xff]  ;;  %s161_s11 = sshll.u32 %s352_s5, 4  ;;  %s162_s11 = int_to_ptr.hbm [resolvable:$true] %s161_s11 }
   0xf   :  { %v64_v4 = vsel %vm55_vm0, %v62_v2, 0.0  ;;  %v67_v7 = vsel %vm55_vm0, %v63_v5, 0.0  ;;  %177 = vmatpush.msra.mxu1 %v119_v8  ;;  %v187_v39 = vld [vmem:[%s349_s2] ss:$0 sm:$0xff] }
  0x10   :  { %65 = vadd.xlane.f32.xlu1 %v64_v4  ;;  %143 = vmatpush.msra.mxu0 %v118_v9  ;;  %v188_v50 = vld [vmem:[%s351_s4] ss:$0 sm:$0xff] }
  0x11   :  { %178 = vmatpush.msra.mxu1 %v118_v9 }
  0x12   :  { %144 = vmatpush.msra.mxu0 %v117_v10 }
  0x13   :  { %179 = vmatpush.msra.mxu1 %v117_v10 }
  0x14   :  { %145 = vmatpush.msra.mxu0 %v116_v11 }
  0x15   :  { %180 = vmatpush.msra.mxu1 %v116_v11 }
  0x16   :  { %60 = vadd.xlane.f32.xlu0 %v59_v6 }
  0x18   :  { %68 = vadd.xlane.f32.xlu1 %v67_v7 }
  0x81   :  { %v58_v12 = vpop.xlane.xlu0 %57 }
  0x82   :  { %v70_v13 = vmul.f32 0.03125, %v58_v12 }
  0x83   :  { %v66_v14 = vpop.xlane.xlu1 %65 }
  0x84   :  { %v74_v15 = vmul.f32 %v70_v13, %v70_v13  ;;  %v72_v16 = vmul.f32 0.03125, %v66_v14  ;;  %v100_v34 = vsub.f32 %v53_v0, %v70_v13 }
  0x86   :  { %v76_v17 = vsub.f32 %v72_v16, %v74_v15 }
  0x88   :  { %v78_v18 = vadd.f32 1e-05, %v76_v17 }
  0x89   :  { %v61_v19 = vpop.xlane.xlu0 %60 }
  0x8a   :  { %189 = vrsqrt.f32 %v78_v18  ;;  %v71_v20 = vmul.f32 0.03125, %v61_v19  ;;  %vm86_vm2 = vweird.f32 %v78_v18 }
  0x8b   :  { %v69_v21 = vpop.xlane.xlu1 %68 }
  0x8c   :  { %v75_v22 = vmul.f32 %v71_v20, %v71_v20  ;;  %v73_v23 = vmul.f32 0.03125, %v69_v21  ;;  %v101_v45 = vsub.f32 %v319_v3, %v71_v20 }
  0x8e   :  { %v77_v24 = vsub.f32 %v73_v23, %v75_v22 }
  0x90   :  { %v190_v25 = vpop.eup %189  ;;  %v79_v26 = vadd.f32 1e-05, %v77_v24 }
  0x91   :  { %v81_v27 = vmul.f32 %v190_v25, %v78_v18  ;;  %vm87_vm1 = vweird.f32 %v190_v25 }
  0x92   :  { %191 = vrsqrt.f32 %v79_v26  ;;  %vm88_vm3 = vmor %vm86_vm2, %vm87_vm1  ;;  %vm96_vm5 = vweird.f32 %v79_v26 }
  0x93   :  { %v82_v28 = vmul.f32 %v190_v25, %v81_v27 }
  0x95   :  { %v83_v29 = vmul.f32 0.5, %v82_v28 }
  0x97   :  { %v84_v30 = vsub.f32 1.5, %v83_v29 }
  0x98   :  { %v192_v31 = vpop.eup %191 }
  0x99   :  { %v85_v32 = vmul.f32 %v190_v25, %v84_v30  ;;  %v91_v33 = vmul.f32 %v192_v31, %v79_v26  ;;  %vm97_vm4 = vweird.f32 %v192_v31 }
  0x9a   :  { %vm98_vm6 = vmor %vm96_vm5, %vm97_vm4 }
  0x9b   :  { %v92_v36 = vmul.f32 %v192_v31, %v91_v33  ;;  %v89_v37 = vsel %vm88_vm3, %v190_v25, %v85_v32 }
  0x9c   :  { %v102_v38 = vmul.f32 %v100_v34, %v89_v37 }
  0x9d   :  { %v93_v40 = vmul.f32 0.5, %v92_v36 }
  0x9e   :  { %v108_v41 = vmul.f32 %v186_v35, %v102_v38 }
  0x9f   :  { %v94_v42 = vsub.f32 1.5, %v93_v40 }
  0xa0   :  { %v114_v43 = vadd.f32 %v187_v39, %v108_v41 }
  0xa1   :  { %v95_v44 = vmul.f32 %v192_v31, %v94_v42 }
  0xa2   :  { %175 = vmatmul.msk.f32.vlgmr.msra.gmra.mxu0 %vm55_vm0, %v114_v43 }
  0xa3   :  { %v99_v46 = vsel %vm98_vm6, %v192_v31, %v95_v44 }
  0xa4   :  { %v103_v47 = vmul.f32 %v101_v45, %v99_v46 }
  0xa6   :  { %v109_v48 = vmul.f32 %v186_v35, %v103_v47 }
  0xa8   :  { %v115_v49 = vadd.f32 %v187_v39, %v109_v48 }
  0xaa   :  { %176 = vmatmul.msk.f32.vlgmr.msra.gmra.mxu1 %vm55_vm0, %v115_v49 }
 0x11f   :  { %v147_v51 = vpop.f32.mrf.mxu0 }
 0x120   :  { %v148_v52 = vadd.f32 %v188_v50, %v147_v51 }
 0x122   :  { %153 = vst.msk [vmem:[#allocation7] sm:$0xff] %vm55_vm0, %v148_v52 }
 0x127   :  { %v150_v53 = vpop.f32.mrf.mxu1 }
 0x128   :  { %v151_v54 = vadd.f32 %v188_v50, %v150_v53 }
 0x12a   :  { %154 = vst.msk [vmem:[#allocation7 + $0x8] sm:$0xff] %vm55_vm0, %v151_v54 }
 0x12b   :  { %167 = dma.vmem_to_hbm [thread:$0]  %s160_s8, 256, %s162_s11, [#allocation4], %s272_s26, %s272_s26, %s273_s27  }
 0x12c   :  { %269 = dma.done.wait [#allocation4], 256  }
 0x12d   :  { %270 = vsyncadd [#allocation4], 4294967040 }
 0x12e   :  { %172 = vsyncpa [#allocation3], 1 }
 0x12f   :  { %173 = vsyncpa [#allocation6], 1 }
 0x130   :  { %174 = vsyncpa [#allocation4], 1 }

</bundles_post_ra>
